<compile_context>
chip_gen: v7x
topology: tpu7x:2x2x1
jax: 0.10.0
libtpu: 0.0.40
codegen_flags: <defaults>
</compile_context>

<pallas_src>
import jax
import jax.numpy as jnp
from jax.experimental import pallas as pl
from jax.experimental.pallas import tpu as pltpu


def time_embed_kernel(t_ref, w_ref, b_ref, o_ref):
    # t_ref: (TB, 1), w_ref: (1, D), b_ref: (1, D), o_ref: (TB, D)
    # VPU broadcast multiply-add (outer product with K=1), fused ReLU.
    y = t_ref[...] * w_ref[...] + b_ref[...]
    o_ref[...] = jnp.maximum(y, 0.0).astype(o_ref.dtype)


def _round_up(x, m):
    return ((x + m - 1) // m) * m


# Conservative double-buffered *output* VMEM budget (bytes): fits the 32 MiB
# default scoped VMEM on v7x as well as v5e/v6e (128 MiB physical).
_VMEM_OUT_BUDGET = 24 * 1024 * 1024
_SMALL_B = 1024          # grid-less path threshold (whole problem = one block)
_MAX_BLOCK_B = 4096      # 4 MiB fp32 output tile at D=256


def _pick_block_b(B, D, out_itemsize):
    # Cap so the double-buffered output tile stays under the VMEM budget
    # (the v7x guard — D is a free parameter of this module).
    vmem_cap = max(8, (_VMEM_OUT_BUDGET // (2 * D * out_itemsize)) // 8 * 8)
    cap = min(_MAX_BLOCK_B, vmem_cap)
    # Keep >=4 grid steps when possible so the "parallel" batch axis can be
    # sharded across both v7x TensorCores (no-op on single-TC v5e/v6e).
    block = min(cap, _round_up(pl.cdiv(B, 4), 8))
    return max(8, block)


def time_embed(t, w_t, b, *, block_b=None, out_dtype=jnp.float32):
    """Linear(1, D) + ReLU.

    t: (B, 1) fp32; w_t: (1, D) fp32 (transposed Linear weight); b: (1, D) fp32.
    Returns (B, D) in `out_dtype` (fp32 VPU math; bf16 output halves the HBM
    write traffic of this write-bound op if the consumer tolerates it).
    """
    B = t.shape[0]
    D = w_t.shape[1]
    # NOTE: D=256 is already lane-dense (2 x 128 lanes). If D were ever < 128
    # or not a multiple of 128, pad D to a multiple of 128 before the
    # pallas_call to avoid masked vst.msk partial stores (~4.5x store penalty).
    out_shape = jax.ShapeDtypeStruct((B, D), out_dtype)
    out_itemsize = jnp.dtype(out_dtype).itemsize

    # Advisory scheduling hint: ~zero arithmetic intensity, HBM-write-bound.
    cost = pl.CostEstimate(
        flops=2 * B * D,
        transcendentals=0,
        bytes_accessed=B * 4 + 2 * D * 4 + B * D * out_itemsize,
    )

    small_thresh = _SMALL_B if block_b is None else block_b
    if B <= small_thresh:
        # Grid-less: whole problem is one VMEM block; no grid machinery.
        # TODO(synk): for production, fuse this op into its consumer kernel so
        # the (B, D) embedding never round-trips HBM — the only remaining
        # order-of-magnitude win for this op.
        return pl.pallas_call(
            time_embed_kernel,
            out_shape=out_shape,
            in_specs=[
                pl.BlockSpec(memory_space=pltpu.MemorySpace.VMEM),
                pl.BlockSpec(memory_space=pltpu.MemorySpace.VMEM),
                pl.BlockSpec(memory_space=pltpu.MemorySpace.VMEM),
            ],
            out_specs=pl.BlockSpec(memory_space=pltpu.MemorySpace.VMEM),
            cost_estimate=cost,
        )(t, w_t, b)

    if block_b is None:
        block_b = _pick_block_b(B, D, out_itemsize)

    grid = (pl.cdiv(B, block_b),)
    return pl.pallas_call(
        time_embed_kernel,
        out_shape=out_shape,
        grid=grid,
        in_specs=[
            pl.BlockSpec((block_b, 1), lambda i: (i, 0)),
            pl.BlockSpec((1, D), lambda i: (0, 0)),   # params stay resident
            pl.BlockSpec((1, D), lambda i: (0, 0)),
        ],
        out_specs=pl.BlockSpec((block_b, D), lambda i: (i, 0)),
        compiler_params=pltpu.CompilerParams(
            dimension_semantics=("parallel",),
        ),
        cost_estimate=cost,
    )(t, w_t, b)


if __name__ == "__main__":
    time_embed_dim = 256
    batch = 8

    key = jax.random.PRNGKey(0)
    k_t, k_w, k_b = jax.random.split(key, 3)

    # nn.Linear(1, D) init: U(-1/sqrt(in), 1/sqrt(in)) with in_features=1 -> U(-1, 1).
    w = jax.random.uniform(k_w, (time_embed_dim, 1), jnp.float32, -1.0, 1.0)  # (D, 1)
    b = jax.random.uniform(k_b, (time_embed_dim,), jnp.float32, -1.0, 1.0)    # (D,)
    t = jax.random.normal(k_t, (batch, 1), jnp.float32)                       # (B, 1)

    w_t = w.T.reshape(1, time_embed_dim)   # (1, D)
    b2 = b.reshape(1, time_embed_dim)      # (1, D)

    def ref_fn(tt):
        return jnp.maximum(tt @ w.T + b[None, :], 0.0)

    # Small-batch grid-less path (fp32 out).
    out = jax.block_until_ready(time_embed(t, w_t, b2))
    assert out.shape == (batch, time_embed_dim)
    assert jnp.allclose(out, ref_fn(t), atol=1e-5, rtol=1e-5)

    # Small-batch path with bf16 output (fp32 math, narrowed store).
    out_bf16 = jax.block_until_ready(time_embed(t, w_t, b2, out_dtype=jnp.bfloat16))
    assert out_bf16.dtype == jnp.bfloat16
    assert jnp.allclose(out_bf16.astype(jnp.float32), ref_fn(t), atol=2e-2, rtol=2e-2)

    # Tiled large-batch path with auto block_b (4 grid steps, megacore-friendly).
    t_big = jax.random.normal(k_t, (4096, 1), jnp.float32)
    out_big = jax.block_until_ready(time_embed(t_big, w_t, b2))
    assert out_big.shape == (4096, time_embed_dim)
    assert jnp.allclose(out_big, ref_fn(t_big), atol=1e-5, rtol=1e-5)

    # Ragged batch: B not a multiple of block_b — locks in OOB write masking.
    t_rag = jax.random.normal(k_t, (1000, 1), jnp.float32)
    out_rag = jax.block_until_ready(time_embed(t_rag, w_t, b2, block_b=512))
    assert out_rag.shape == (1000, time_embed_dim)
    assert jnp.allclose(out_rag, ref_fn(t_rag), atol=1e-5, rtol=1e-5)

    print("KERNEL_OK")
</pallas_src>

<mosaic_0001>
module attributes {stable_mosaic.version = 11 : i64} {
  func.func @time_embed_kernel(%arg0: memref<8x1xf32, #tpu.memory_space<vmem>>, %arg1: memref<1x256xf32, #tpu.memory_space<vmem>>, %arg2: memref<1x256xf32, #tpu.memory_space<vmem>>, %arg3: memref<8x256xf32, #tpu.memory_space<vmem>>) attributes {dimension_semantics = [], scalar_prefetch = 0 : i64, scratch_operands = 0 : i64, tpu.core_type = #tpu.core_type<tc>} {
    %c0 = arith.constant 0 : index
    %c0_0 = arith.constant 0 : index
    %0 = vector.load %arg0[%c0, %c0_0] : memref<8x1xf32, #tpu.memory_space<vmem>>, vector<8x1xf32>
    %c0_1 = arith.constant 0 : index
    %c0_2 = arith.constant 0 : index
    %1 = vector.load %arg1[%c0_1, %c0_2] : memref<1x256xf32, #tpu.memory_space<vmem>>, vector<1x256xf32>
    %2 = vector.broadcast %0 : vector<8x1xf32> to vector<8x256xf32>
    %3 = vector.broadcast %1 : vector<1x256xf32> to vector<8x256xf32>
    %4 = arith.mulf %2, %3 : vector<8x256xf32>
    %c0_3 = arith.constant 0 : index
    %c0_4 = arith.constant 0 : index
    %5 = vector.load %arg2[%c0_3, %c0_4] : memref<1x256xf32, #tpu.memory_space<vmem>>, vector<1x256xf32>
    %6 = vector.broadcast %5 : vector<1x256xf32> to vector<8x256xf32>
    %7 = arith.addf %4, %6 : vector<8x256xf32>
    %cst = arith.constant 0.000000e+00 : f32
    %8 = vector.broadcast %cst : f32 to vector<8x256xf32>
    %9 = arith.maximumf %7, %8 : vector<8x256xf32>
    %c0_5 = arith.constant 0 : index
    %c0_6 = arith.constant 0 : index
    %10 = vector.load %arg3[%c0_5, %c0_6] : memref<8x256xf32, #tpu.memory_space<vmem>>, vector<8x256xf32>
    tpu.vector_store %arg3[%c0_5, %c0_6], %9 {strides = array<i32>} : memref<8x256xf32, #tpu.memory_space<vmem>>, vector<8x256xf32>,
    return
  }
}

</mosaic_0001>

<bundles_post_ra>
// kernel: tpu_custom_call.1
= control target key start
LH: loop header
LB: loop body
LE: loop exit
PB: predicated region body
PF: predicated region fallthrough
CT: control target
= control target key end

     0   :  { %v94_v1 = vmov 0   ;;  %s137_s0 = inlined_call_operand.vmem [shape: f32[8,1], index: 0, kind: input, shape index: {}]   ;;  %s138_s1 = inlined_call_operand.vmem [shape: f32[1,256], index: 1, kind: input, shape index: {}]   ;;  %s139_s2 = inlined_call_operand.vmem [shape: f32[1,256], index: 2, kind: input, shape index: {}]   ;;  %s140_s3 = inlined_call_operand.hbm [shape: f32[8,256], index: 3, kind: output, shape index: {}]  }
   0x1   :  { %v15_v0 = vld [vmem:[%s137_s0] sm:$0xff]  ;;  %69 = vset.pattern.permute.xlu0 %v94_v1 }
   0x2   :  { %8 = vsyncpa [#allocation3], 0  ;;  %19 = vperm.xlu0 %69, %v15_v0   ;;  %v23_v2 = vlaneseq  ;;  %v16_v6 = vld [vmem:[%s138_s1] sm:$0x3]  ;;  %s95_s0 = smov [#allocation2]  }
   0x3   :  { %v35_v7 = vld [vmem:[%s139_s2] sm:$0x3]  ;;  %s59_s18 = sshll.u32 %s95_s0, 4  ;;  %s60_s18 = int_to_ptr.vmem [resolvable:$true] %s59_s18 }
   0x4   :  { %v24_v3 = vshrl.u32 %v23_v2, 7  ;;  %s70_s1 = scalar_lea.vmem %s60_s18, 256  ;;  %p75_p1 = scmp.lt.s32.totalorder %s60_s18, %s60_s18 }
   0x5   :  { %p71_p0 = scmp.ne.s32.totalorder %s60_s18, %s70_s1  ;;  %p76_p2 = scmp.lt.s32.totalorder %s70_s1, %s70_s1 }
   0x6   :  { %v25_v4 = vsub.s32 0, %v24_v3  ;;  %v29_v5 = vsub.s32 1, %v24_v3 }
   0x7   :  { %p77_p3 = por %p76_p2, %p75_p1 }
   0x8   :  { %v26_v8 = vrot.slane %v16_v6, %v25_v4  ;;  %v30_v9 = vrot.slane %v16_v6, %v29_v5  ;;  %v40_v10 = vrot.slane %v35_v7, %v25_v4  ;;  %v44_v11 = vrot.slane %v35_v7, %v29_v5 }
   0x9   :  { %p78_p4 = pnand %p77_p3, %p71_p0 }
  0x81   :  { %v20_v12 = vpop.permute.xlu0 %19 }
  0x82   :  { %v33_v13 = vmul.f32 %v26_v8, %v20_v12  ;;  %v34_v14 = vmul.f32 %v30_v9, %v20_v12 }
  0x84   :  { %v47_v15 = vadd.f32 %v40_v10, %v33_v13  ;;  %v48_v16 = vadd.f32 %v44_v11, %v34_v14 }
  0x86   :  { %v49_v17 = vmax.f32 %v47_v15, 0.0  ;;  %v50_v18 = vmax.f32 %v48_v16, 0.0 }
  0x88   :  { %51 = vst [vmem:[#allocation2] sm:$0xff] %v49_v17  ;;  %52 = vst [vmem:[#allocation2 + $0x8] sm:$0xff] %v50_v18 }
  0x89   :  { %81 = shalt.err (!%p78_p4)
}
  0x8a   :  { %s82_s20 = scalar_lea.hbm %s140_s3, 256 }
  0x8b   :  { %p83_p5 = scmp.ne.s32.totalorder %s140_s3, %s82_s20  ;;  %p86_p6 = scmp.lt.u32.totalorder %s82_s20, %s140_s3 }
  0x8d   :  { %p88_p7 = pnand %p86_p6, %p83_p5 }
  0x8f   :  { %91 = shalt.err (!%p88_p7)
}
  0x90   :  { %62 = dma.vmem_to_hbm [thread:$0]  %s60_s18, 256, %s140_s3, [#allocation3]  }
  0x91   :  { %92 = dma.done.wait [#allocation3], 256  }
  0x92   :  { %93 = vsyncadd [#allocation3], 4294967040 }
  0x93   :  { %66 = vsyncpa [#allocation3], 1 }

</bundles_post_ra>
